<compile_context>
chip_gen: v7x
topology: tpu7x:2x2x1
jax: 0.10.0
libtpu: 0.0.40
codegen_flags: <defaults>
</compile_context>

<pallas_src>
import functools

import jax
import jax.numpy as jnp
from jax import lax
from jax.experimental import pallas as pl
from jax.experimental.pallas import tpu as pltpu


def _context_kernel(x_ref, wkv_ref, seg_ref, wout_ref, ctxw_ref, ctx_acc,
                    *, heads, dim_head, scale):
    """Phase 1: accumulate the all-heads (inner, inner) context over N-chunks.

    x_ref   : (chunk, D)      bf16  current sequence chunk of one batch element
    wkv_ref : (D, 2*inner)    bf16  [W_k | W_v]
    seg_ref : (inner, inner)  bf16  block-diagonal ones (per-head structure)
    wout_ref: (inner, D)      bf16  output projection weight
    ctxw_ref: (inner, D)      bf16  OUT: scale * (mask*ctx) @ W_out   (per batch)
    ctx_acc : (inner, inner)  f32   VMEM scratch accumulator
    """
    c = pl.program_id(1)
    inner = heads * dim_head

    @pl.when(c == 0)
    def _init():
        ctx_acc[...] = jnp.zeros_like(ctx_acc)

    # K/V projection for this chunk (bf16 operands, f32 accumulation on MXU).
    kv = jnp.dot(x_ref[...], wkv_ref[...], preferred_element_type=jnp.float32)
    k = kv[:, :inner]                                   # (chunk, inner) f32
    v = kv[:, inner:]                                   # (chunk, inner) f32

    # softmax over each head's dim_head features, kept fully lane-dense:
    #  - subtracting the per-row global max is a valid per-group shift
    #  - per-group sums come from ONE block-diag-ones matmul (no 32-lane slices)
    k = k - jnp.max(k, axis=-1, keepdims=True)
    ke = jnp.exp(k)                                     # f32 (EUP)
    denom = jnp.dot(ke.astype(jnp.bfloat16), seg_ref[...],
                    preferred_element_type=jnp.float32)  # (chunk, inner) group sums
    ksoft = ke * pl.reciprocal(denom, approx=True)

    # All-heads context in one >=128-wide matmul: (inner, chunk) @ (chunk, inner).
    ctx_acc[...] += lax.dot_general(
        ksoft.astype(jnp.bfloat16), v.astype(jnp.bfloat16),
        (((0,), (0,)), ((), ())), preferred_element_type=jnp.float32)

    @pl.when(c == pl.num_programs(1) - 1)
    def _finalize():
        # Zero the cross-head blocks, then fold in the output projection and the
        # q-scale:  (scale*q) @ (mask*ctx) @ W_out  ==  q @ ctx_w.
        ctx_m = (ctx_acc[...] * seg_ref[...].astype(jnp.float32)).astype(jnp.bfloat16)
        ctx_w = jnp.dot(ctx_m, wout_ref[...], preferred_element_type=jnp.float32)
        ctxw_ref[...] = (ctx_w * scale).astype(ctxw_ref.dtype)


def _apply_kernel(x_ref, wq_ref, ctxw_ref, bout_ref, o_ref):
    """Phase 2: y_chunk = (x_chunk @ W_q) @ ctx_w + b   (two lane-dense matmuls)."""
    q = jnp.dot(x_ref[...], wq_ref[...], preferred_element_type=jnp.float32)
    y = jnp.dot(q.astype(jnp.bfloat16), ctxw_ref[...],
                preferred_element_type=jnp.float32)
    o_ref[...] = (y + bout_ref[...]).astype(o_ref.dtype)


def _pick_chunk(n, target=512):
    """Largest sequence chunk <= target that divides n and is bf16-sublane friendly."""
    if n <= target:
        return n
    for c in range(target, 15, -1):
        if n % c == 0 and c % 16 == 0:
            return c
    return n  # fallback: whole sequence (full-extent block is always legal)


def linear_attention(x, w_qkv, w_out, b_out, *, heads, dim_head, chunk=None):
    B, N, D = x.shape
    inner = heads * dim_head
    assert w_qkv.shape == (D, 3 * inner)
    assert w_out.shape == (inner, D)
    scale = float(dim_head) ** -0.5

    if chunk is None:
        chunk = _pick_chunk(N)
    assert N % chunk == 0
    n_chunks = N // chunk

    # bf16 matmul operands (f32 accumulation inside the kernels).
    x_bf = x.astype(jnp.bfloat16)
    w_q = w_qkv[:, :inner].astype(jnp.bfloat16)          # (D, inner)
    w_kv = w_qkv[:, inner:].astype(jnp.bfloat16)         # (D, 2*inner)
    w_o = w_out.astype(jnp.bfloat16)                     # (inner, D)
    b2 = b_out.reshape(1, D).astype(jnp.float32)

    # Block-diagonal ones: segmented-softmax denominator + cross-head mask.
    hid = jnp.arange(inner, dtype=jnp.int32) // dim_head
    seg = (hid[:, None] == hid[None, :]).astype(jnp.bfloat16)   # (inner, inner)

    ctx_kernel = functools.partial(
        _context_kernel, heads=heads, dim_head=dim_head, scale=scale)

    ctx_cost = pl.CostEstimate(
        flops=int(2 * B * N * D * 2 * inner              # K/V projection
                  + 2 * B * N * inner * inner            # segmented softmax denom
                  + 2 * B * N * inner * inner            # context accumulation
                  + 2 * B * inner * inner * D),          # fold W_out (per batch)
        transcendentals=int(2 * B * N * inner),
        bytes_accessed=int(2 * B * N * D + 2 * D * 2 * inner + 2 * inner * inner
                           + 2 * inner * D + 2 * B * inner * D))

    ctx_w = pl.pallas_call(
        ctx_kernel,
        out_shape=jax.ShapeDtypeStruct((B, inner, D), jnp.bfloat16),
        grid_spec=pltpu.PrefetchScalarGridSpec(
            num_scalar_prefetch=0,
            grid=(B, n_chunks),                          # reduction axis last
            in_specs=[
                pl.BlockSpec((pl.Squeezed(), chunk, D), lambda b, c: (b, c, 0)),
                pl.BlockSpec((D, 2 * inner), lambda b, c: (0, 0)),
                pl.BlockSpec((inner, inner), lambda b, c: (0, 0)),
                pl.BlockSpec((inner, D), lambda b, c: (0, 0)),
            ],
            out_specs=pl.BlockSpec((pl.Squeezed(), inner, D),
                                   lambda b, c: (b, 0, 0)),
            scratch_shapes=[pltpu.VMEM((inner, inner), jnp.float32)],
        ),
        compiler_params=pltpu.CompilerParams(
            dimension_semantics=("parallel", "arbitrary")),
        cost_estimate=ctx_cost,
    )(x_bf, w_kv, seg, w_o)

    apply_cost = pl.CostEstimate(
        flops=int(4 * B * N * D * inner),
        transcendentals=0,
        bytes_accessed=int(2 * B * N * D + 2 * D * inner + 2 * B * inner * D
                           + 4 * D + x.dtype.itemsize * B * N * D))

    y = pl.pallas_call(
        _apply_kernel,
        out_shape=jax.ShapeDtypeStruct((B, N, D), x.dtype),
        grid_spec=pltpu.PrefetchScalarGridSpec(
            num_scalar_prefetch=0,
            grid=(B, n_chunks),
            in_specs=[
                pl.BlockSpec((pl.Squeezed(), chunk, D), lambda b, c: (b, c, 0)),
                pl.BlockSpec((D, inner), lambda b, c: (0, 0)),
                pl.BlockSpec((pl.Squeezed(), inner, D), lambda b, c: (b, 0, 0)),
                pl.BlockSpec((1, D), lambda b, c: (0, 0)),
            ],
            out_specs=pl.BlockSpec((pl.Squeezed(), chunk, D),
                                   lambda b, c: (b, c, 0)),
        ),
        compiler_params=pltpu.CompilerParams(
            dimension_semantics=("parallel", "parallel")),
        cost_estimate=apply_cost,
    )(x_bf, w_q, ctx_w, b2)

    return y


def linear_attention_ref(x, w_qkv, w_out, b_out, *, heads, dim_head):
    """Pure-JAX f32 reference mirroring the PyTorch forward."""
    B, N, D = x.shape
    inner = heads * dim_head
    scale = float(dim_head) ** -0.5
    qkv = x @ w_qkv                                       # (B, N, 3*inner)
    q, k, v = jnp.split(qkv, 3, axis=-1)

    def to_heads(t):
        return t.reshape(B, N, heads, dim_head).transpose(0, 2, 1, 3)

    q, k, v = map(to_heads, (q, k, v))
    q = q * scale
    k = jax.nn.softmax(k, axis=-1)
    context = jnp.einsum('bhnd,bhne->bhde', k, v)
    out = jnp.einsum('bhnd,bhde->bhne', q, context)
    out = out.transpose(0, 2, 1, 3).reshape(B, N, inner)
    return out @ w_out + b_out


if __name__ == "__main__":
    # Small, module-consistent shapes; chunk=16 exercises the multi-chunk
    # (pipelined, context-accumulating) path.
    B, N, DIM = 2, 32, 32
    HEADS, DIM_HEAD = 4, 32
    INNER = HEADS * DIM_HEAD

    key = jax.random.PRNGKey(0)
    kx, kq, ko, kb = jax.random.split(key, 4)

    x = jax.random.normal(kx, (B, N, DIM), dtype=jnp.float32)
    # Deterministic synthetic parameters (roughly torch-Linear-scale init).
    w_qkv = jax.random.uniform(kq, (DIM, 3 * INNER), dtype=jnp.float32,
                               minval=-1.0, maxval=1.0) * (DIM ** -0.5)
    w_out = jax.random.uniform(ko, (INNER, DIM), dtype=jnp.float32,
                               minval=-1.0, maxval=1.0) * (INNER ** -0.5)
    b_out = jax.random.uniform(kb, (DIM,), dtype=jnp.float32,
                               minval=-1.0, maxval=1.0) * (INNER ** -0.5)

    y = linear_attention(x, w_qkv, w_out, b_out,
                         heads=HEADS, dim_head=DIM_HEAD, chunk=16)
    y = jax.block_until_ready(y)

    y_ref = linear_attention_ref(x, w_qkv, w_out, b_out,
                                 heads=HEADS, dim_head=DIM_HEAD)
    assert y.shape == (B, N, DIM)
    # bf16 matmul operands + approx reciprocal => looser tolerance than pure f32.
    err = float(jnp.max(jnp.abs(y - y_ref)))
    assert jnp.allclose(y, y_ref, atol=3e-2, rtol=3e-2), (
        f"mismatch vs reference (max abs err {err})")

    print("KERNEL_OK")
</pallas_src>

<mosaic_0001>
module attributes {stable_mosaic.version = 11 : i64} {
  func.func @_context_kernel(%arg0: i32, %arg1: i32, %arg2: memref<1x16x32xbf16, #tpu.memory_space<vmem>>, %arg3: memref<32x256xbf16, #tpu.memory_space<vmem>>, %arg4: memref<128x128xbf16, #tpu.memory_space<vmem>>, %arg5: memref<128x32xbf16, #tpu.memory_space<vmem>>, %arg6: memref<1x128x32xbf16, #tpu.memory_space<vmem>>, %arg7: memref<128x128xf32, #tpu.memory_space<vmem>>) attributes {dimension_semantics = [#tpu.dimension_semantics<parallel>, #tpu.dimension_semantics<arbitrary>], iteration_bounds = array<i64: 2, 2>, scalar_prefetch = 0 : i64, scratch_operands = 1 : i64, tpu.core_type = #tpu.core_type<tc>, window_params = [{transform_indices = @transform_0, window_bounds = array<i64: 1, 16, 32>}, {pipeline_mode = #tpu.pipeline_mode<synchronous>, transform_indices = @transform_1, window_bounds = array<i64: 32, 256>}, {pipeline_mode = #tpu.pipeline_mode<synchronous>, transform_indices = @transform_2, window_bounds = array<i64: 128, 128>}, {pipeline_mode = #tpu.pipeline_mode<synchronous>, transform_indices = @transform_3, window_bounds = array<i64: 128, 32>}, {transform_indices = @transform_4, window_bounds = array<i64: 1, 128, 32>}]} {
    %c0_i32 = arith.constant 0 : i32
    %0 = arith.cmpi eq, %arg1, %c0_i32 : i32
    %1 = arith.extui %0 : i1 to i32
    %c0_i32_0 = arith.constant 0 : i32
    %2 = arith.cmpi ne, %1, %c0_i32_0 : i32
    scf.if %2 {
      %cst_15 = arith.constant 0.000000e+00 : f32
      %28 = vector.broadcast %cst_15 : f32 to vector<128x128xf32>
      %c0_16 = arith.constant 0 : index
      %c0_17 = arith.constant 0 : index
      %29 = vector.load %arg7[%c0_16, %c0_17] : memref<128x128xf32, #tpu.memory_space<vmem>>, vector<128x128xf32>
      tpu.vector_store %arg7[%c0_16, %c0_17], %28 {strides = array<i32>} : memref<128x128xf32, #tpu.memory_space<vmem>>, vector<128x128xf32>,
    } else {
    }
    %c0 = arith.constant 0 : index
    %c0_1 = arith.constant 0 : index
    %c0_2 = arith.constant 0 : index
    %3 = vector.load %arg2[%c0, %c0_1, %c0_2] : memref<1x16x32xbf16, #tpu.memory_space<vmem>>, vector<1x16x32xbf16>
    %4 = vector.shape_cast %3 : vector<1x16x32xbf16> to vector<16x32xbf16>
    %c0_3 = arith.constant 0 : index
    %c0_4 = arith.constant 0 : index
    %5 = vector.load %arg3[%c0_3, %c0_4] : memref<32x256xbf16, #tpu.memory_space<vmem>>, vector<32x256xbf16>
    %cst = arith.constant dense<0.000000e+00> : vector<16x256xf32>
    %6 = tpu.matmul %4, %5, %cst {dimension_numbers = #tpu.dot_dimension_numbers<[1], [0], [0], [1], [0, 0, 1, 1], [], []>} : vector<16x32xbf16>, vector<32x256xbf16>, vector<16x256xf32> -> vector<16x256xf32>
    %7 = vector.extract_strided_slice %6 {offsets = [0, 0], sizes = [16, 128], strides = [1, 1]} : vector<16x256xf32> to vector<16x128xf32>
    %8 = vector.extract_strided_slice %6 {offsets = [0, 128], sizes = [16, 128], strides = [1, 1]} : vector<16x256xf32> to vector<16x128xf32>
    %cst_5 = arith.constant dense<0xFF800000> : vector<16xf32>
    %9 = vector.multi_reduction <maximumf>, %7, %cst_5 [1] : vector<16x128xf32> to vector<16xf32>
    %10 = vector.shape_cast %9 : vector<16xf32> to vector<16x1xf32>
    %11 = vector.broadcast %10 : vector<16x1xf32> to vector<16x128xf32>
    %12 = arith.subf %7, %11 : vector<16x128xf32>
    %13 = math.exp %12 : vector<16x128xf32>
    %14 = arith.truncf %13 : vector<16x128xf32> to vector<16x128xbf16>
    %c0_6 = arith.constant 0 : index
    %c0_7 = arith.constant 0 : index
    %15 = vector.load %arg4[%c0_6, %c0_7] : memref<128x128xbf16, #tpu.memory_space<vmem>>, vector<128x128xbf16>
    %cst_8 = arith.constant dense<0.000000e+00> : vector<16x128xf32>
    %16 = tpu.matmul %14, %15, %cst_8 {dimension_numbers = #tpu.dot_dimension_numbers<[1], [0], [0], [1], [0, 0, 1, 1], [], []>} : vector<16x128xbf16>, vector<128x128xbf16>, vector<16x128xf32> -> vector<16x128xf32>
    %17 = tpu.reciprocal %16 {approx = true} : vector<16x128xf32> -> vector<16x128xf32>
    %18 = arith.mulf %13, %17 : vector<16x128xf32>
    %c0_9 = arith.constant 0 : index
    %c0_10 = arith.constant 0 : index
    %19 = vector.load %arg7[%c0_9, %c0_10] : memref<128x128xf32, #tpu.memory_space<vmem>>, vector<128x128xf32>
    %20 = arith.truncf %18 : vector<16x128xf32> to vector<16x128xbf16>
    %21 = arith.truncf %8 : vector<16x128xf32> to vector<16x128xbf16>
    %cst_11 = arith.constant dense<0.000000e+00> : vector<128x128xf32>
    %22 = tpu.matmul %20, %21, %cst_11 {dimension_numbers = #tpu.dot_dimension_numbers<[0], [0], [1], [1], [0, 1, 1, 1], [], []>} : vector<16x128xbf16>, vector<16x128xbf16>, vector<128x128xf32> -> vector<128x128xf32>
    %23 = arith.addf %19, %22 : vector<128x128xf32>
    %c0_12 = arith.constant 0 : index
    %c0_13 = arith.constant 0 : index
    %24 = vector.load %arg7[%c0_12, %c0_13] : memref<128x128xf32, #tpu.memory_space<vmem>>, vector<128x128xf32>
    tpu.vector_store %arg7[%c0_12, %c0_13], %23 {strides = array<i32>} : memref<128x128xf32, #tpu.memory_space<vmem>>, vector<128x128xf32>,
    %c1_i32 = arith.constant 1 : i32
    %25 = arith.cmpi eq, %arg1, %c1_i32 : i32
    %26 = arith.extui %25 : i1 to i32
    %c0_i32_14 = arith.constant 0 : i32
    %27 = arith.cmpi ne, %26, %c0_i32_14 : i32
    scf.if %27 {
      %c0_15 = arith.constant 0 : index
      %c0_16 = arith.constant 0 : index
      %28 = vector.load %arg7[%c0_15, %c0_16] : memref<128x128xf32, #tpu.memory_space<vmem>>, vector<128x128xf32>
      %c0_17 = arith.constant 0 : index
      %c0_18 = arith.constant 0 : index
      %29 = vector.load %arg4[%c0_17, %c0_18] : memref<128x128xbf16, #tpu.memory_space<vmem>>, vector<128x128xbf16>
      %30 = arith.extf %29 : vector<128x128xbf16> to vector<128x128xf32>
      %31 = arith.mulf %28, %30 : vector<128x128xf32>
      %32 = arith.truncf %31 : vector<128x128xf32> to vector<128x128xbf16>
      %c0_19 = arith.constant 0 : index
      %c0_20 = arith.constant 0 : index
      %33 = vector.load %arg5[%c0_19, %c0_20] : memref<128x32xbf16, #tpu.memory_space<vmem>>, vector<128x32xbf16>
      %cst_21 = arith.constant dense<0.000000e+00> : vector<128x32xf32>
      %34 = tpu.matmul %32, %33, %cst_21 {dimension_numbers = #tpu.dot_dimension_numbers<[1], [0], [0], [1], [0, 0, 1, 1], [], []>} : vector<128x128xbf16>, vector<128x32xbf16>, vector<128x32xf32> -> vector<128x32xf32>
      %cst_22 = arith.constant 0.176776692 : f32
      %35 = vector.broadcast %cst_22 : f32 to vector<128x32xf32>
      %36 = arith.mulf %34, %35 : vector<128x32xf32>
      %37 = arith.truncf %36 : vector<128x32xf32> to vector<128x32xbf16>
      %c0_23 = arith.constant 0 : index
      %c0_24 = arith.constant 0 : index
      %c0_25 = arith.constant 0 : index
      %38 = vector.load %arg6[%c0_23, %c0_24, %c0_25] : memref<1x128x32xbf16, #tpu.memory_space<vmem>>, vector<1x128x32xbf16>
      %39 = vector.shape_cast %38 : vector<1x128x32xbf16> to vector<128x32xbf16>
      %40 = vector.shape_cast %37 : vector<128x32xbf16> to vector<1x128x32xbf16>
      tpu.vector_store %arg6[%c0_23, %c0_24, %c0_25], %40 {strides = array<i32>} : memref<1x128x32xbf16, #tpu.memory_space<vmem>>, vector<1x128x32xbf16>,
    } else {
    }
    return
  }
  func.func @transform_0(%arg0: i32, %arg1: i32) -> (i32, i32, i32) {
    %c0_i32 = arith.constant 0 : i32
    %c0_i32_0 = arith.constant 0 : i32
    return %arg0, %arg1, %c0_i32 : i32, i32, i32
  }
  func.func @transform_1(%arg0: i32, %arg1: i32) -> (i32, i32) {
    %c0_i32 = arith.constant 0 : i32
    %c0_i32_0 = arith.constant 0 : i32
    %c0_i32_1 = arith.constant 0 : i32
    return %c0_i32, %c0_i32_0 : i32, i32
  }
  func.func @transform_2(%arg0: i32, %arg1: i32) -> (i32, i32) {
    %c0_i32 = arith.constant 0 : i32
    %c0_i32_0 = arith.constant 0 : i32
    %c0_i32_1 = arith.constant 0 : i32
    return %c0_i32, %c0_i32_0 : i32, i32
  }
  func.func @transform_3(%arg0: i32, %arg1: i32) -> (i32, i32) {
    %c0_i32 = arith.constant 0 : i32
    %c0_i32_0 = arith.constant 0 : i32
    %c0_i32_1 = arith.constant 0 : i32
    return %c0_i32, %c0_i32_0 : i32, i32
  }
  func.func @transform_4(%arg0: i32, %arg1: i32) -> (i32, i32, i32) {
    %c0_i32 = arith.constant 0 : i32
    %c0_i32_0 = arith.constant 0 : i32
    %c0_i32_1 = arith.constant 0 : i32
    return %arg0, %c0_i32, %c0_i32_0 : i32, i32, i32
  }
}

</mosaic_0001>

<bundles_post_ra>
// kernel: tpu_custom_call.1
= control target key start
LH: loop header
LB: loop body
LE: loop exit
PB: predicated region body
PF: predicated region fallthrough
CT: control target
= control target key end

     0   :  { %s1918_s0 = inlined_call_operand.hbm [shape: bf16[2,32,32], index: 0, kind: input, shape index: {}]   ;;  %s1919_s1 = inlined_call_operand.hbm [shape: bf16[32,256], index: 1, kind: input, shape index: {}]   ;;  %s1920_s2 = inlined_call_operand.vmem [shape: bf16[128,128], index: 2, kind: input, shape index: {}]   ;;  %s1921_s3 = inlined_call_operand.vmem [shape: bf16[128,32], index: 3, kind: input, shape index: {}]   ;;  %s1922_s4 = inlined_call_operand.vmem [shape: bf16[2,128,32], index: 4, kind: output, shape index: {}]  }
   0x1   :  { %1929 = sst [smem:[#allocation10_spill]] %s1919_s1 }
   0x2   :  { %1930 = sst [smem:[#allocation11_spill]] %s1921_s3 }
   0x3   :  { %9 = vsyncpa [#allocation4], 0 }
   0x4   :  { %11 = vsyncpa [#allocation4 + $0x1], 0 }
   0x5   :  { %12 = vsyncpa [#allocation6], 0  ;;  %s1608_s15 = smov 0   ;;  %s1610_s16 = smov 0  }
   0x6   :  { %s1612_s17 = smov 0   ;;  %s1614_s18 = smov 0  }
   0x7   :  { %s1616_s19 = smov 0   ;;  %s1618_s20 = smov 0  }
   0x8   :  { %s1620_s21 = smov 0   ;;  %s1622_s22 = smov 0  }
   0x9 LB: > { %s1082_s23 = sadd.s32 4294967295, %s1571_s22   ;;  %p52_p0 = scmp.ne.s32.totalorder %s1547_s16, %s1543_s15  ;;  %s1571_s22 = sphi %s1622_s22, %s18_s22   ;;  %s1567_s21 = sphi %s1620_s21, %s1950_s21   ;;  %s1563_s20 = sphi %s1618_s20, %s1949_s20   ;;  %s1559_s19 = sphi %s1616_s19, %s1948_s19   ;;  %s1555_s18 = sphi %s1614_s18, %s1947_s18   ;;  %s1551_s17 = sphi %s1612_s17, %s1946_s17   ;;  %s1547_s16 = sphi %s1610_s16, %s1945_s16   ;;  %s1543_s15 = sphi %s1608_s15, %s1944_s15  }
   0xa   : > { %p1648_p1 = scmp.eq.s32.totalorder %s1082_s23, 0  ;;  %p1084_p2 = scmp.ge.s32.totalorder %s1571_s22, 1 }
   0xb   : > { %p152_p3 = scmp.lt.s32.totalorder %s1571_s22, 5  ;;  %s1573_s27 = smov [#allocation5]  }
   0xc   : > { %s1931_s24 = scalar_select %p1648_p1, 1, 0 }
   0xd   : > { %p1656_p4 = por %p1648_p1, %p52_p0  ;;  %p1660_p5 = pnand %p1084_p2, %p152_p3 }
   0xe   : > { %s164_s28 = sshll.u32 %s1573_s27, 4  ;;  %s1935_s1 = sld [smem:[#allocation10_spill]]  ;;  %s165_s28 = int_to_ptr.vmem [resolvable:$true] %s164_s28 }
   0xf   : > { %s1932_s25 = scalar_select %p1656_p4, 1, 0 }
  0x10   : > { %s1933_s26 = scalar_select %p1660_p5, 1, 0 }
  0x11   : > { %p1328_p6 = pneg %p1660_p5 }
  0x13   : > { %p1668_p7 = pnand %p1328_p6, %p1648_p1 }
  0x14   : > { %s1443_s6 = scalar_lea.hbm %s1935_s1, 512 }
  0x15   : > { %p1444_p8 = scmp.ne.s32.totalorder %s1935_s1, %s1443_s6  ;;  %p1445_p9 = pneg %p1668_p7 }
  0x16   : > { %p1450_p12 = scmp.lt.u32.totalorder %s1443_s6, %s1935_s1 }
  0x17   : > { %p1446_p10 = pnand %p1445_p9, %p1444_p8 }
  0x19   : > { %p1447_p11 = pneg %p1446_p10 }
  0x1b   : > { %p1452_p13 = pnand %p1450_p12, %p1447_p11 }
  0x1d   : > { %1455 = shalt.err (!%p1452_p13)
}
  0x1e   : > { %s1456_s11 = scalar_lea.vmem %s165_s28, 512  ;;  %p1464_p6 = scmp.lt.s32.totalorder %s165_s28, %s165_s28 }
  0x1f   : > { %p1457_p0 = scmp.ne.s32.totalorder %s165_s28, %s1456_s11  ;;  %p1465_p1 = scmp.lt.s32.totalorder %s1456_s11, %s1456_s11 }
  0x21   : > { %p1459_p2 = pnand %p1457_p0, %p1445_p9  ;;  %p1466_p4 = por %p1465_p1, %p1464_p6 }
  0x23   : > { %p1460_p3 = pneg %p1459_p2 }
  0x25   : > { %p1467_p5 = pnand %p1466_p4, %p1460_p3 }
  0x27   : > { %1470 = shalt.err (!%p1467_p5)
}
  0x28   : > { %s1574_s12 = smov 128   ;;  %s1575_s13 = smov 8  }
  0x29   : > { %1331 = dma.hbm_to_vmem [thread:$0]  (!%p1668_p7), %s1935_s1, 512, %s165_s28, [#allocation6], %s1574_s12, %s1574_s12, %s1575_s13  }
  0x2a   : > { %s27_s23 = sadd.s32 1, %s1563_s20  ;;  %s30_s27 = sadd.s32 1, %s1567_s21 }
  0x2b   : > { %p28_p1 = scmp.ge.s32.totalorder %s27_s23, 2  ;;  %s39_s30 = sadd.s32 1, %s1551_s17 }
  0x2c   : > { %p46_p4 = scmp.ne.s32.totalorder %s1551_s17, %s1547_s16  ;;  %p47_p5 = scmp.eq.s32.totalorder %s1571_s22, 0 }
  0x2d   : > { %s1952_s23 = smov (%p28_p1, %s27_s23), 0  ;;  %s1954_s27 = smov (!%p28_p1, %s30_s27), %s1567_s21 }
  0x2e   : > { %1936 = sst [smem:[#allocation9_spill]] %s1952_s23  ;;  %s35_s5 = ssub.s32 %s1563_s20, %s1952_s23 }
  0x2f   : > { %p32_p8 = scmp.ge.s32.totalorder %s1954_s27, 2  ;;  %p1337_p9 = scmp.lt.s32.totalorder %s1571_s22, 4 }
  0x30   : > { %p1700_p10 = por %p47_p5, %p46_p4  ;;  %s184_s28 = sand.u32 1, %s1551_s17  }
  0x31   : > { %s1956_s27 = smov (%p32_p8, %s1954_s27), 0  ;;  %s1087_s6 = sshll.u32 %s184_s28, 3 }
  0x32   : > { %s34_s7 = ssub.s32 %s1567_s21, %s1956_s27  ;;  %s1088_s9 = sshll.u32 %s1563_s20, 1 }
  0x33   : > { %s36_s8 = sor.u32 %s35_s5, %s34_s7  ;;  %s1089_s10 = sshll.u32 %s1567_s21, 2 }
  0x34   : > { %p37_p7 = scmp.eq.s32.totalorder %s36_s8, 0  ;;  %s194_s11 = sadd.s32 %s1089_s10, %s1088_s9 }
  0x35   : > { %s188_s12 = scalar_lea.vmem [#allocation3], %s1087_s6  ;;  %s1090_s15 = sshll.u32 %s194_s11, 6 }
  0x36   : > { %s197_s13 = sshll.u32 %s188_s12, 4  ;;  %s1719_s3 = scalar_lea.hbm %s1918_s0, %s1090_s15  ;;  %s1714_s13 = int_to_ptr.vmem [resolvable:$true] %s197_s13 }
  0x37   : > { %s1712_s14 = scalar_select %p37_p7, %s1551_s17, %s39_s30  }
  0x38   : > { %p1725_p11 = pnand %p1337_p9, %p1700_p10  ;;  %s1729_s30 = scalar_lea.sflag [#allocation4], %s184_s28 }
  0x39   : > { %s1471_s6 = scalar_lea.hbm %s1719_s3, 128  ;;  %s1476_s29 = scalar_lea.hbm %s1918_s0, 512 }
  0x3a   : > { %p1472_p12 = scmp.ne.s32.totalorder %s1719_s3, %s1471_s6  ;;  %p1473_p13 = pneg %p1725_p11 }
  0x3b   : > { %p1477_p3 = scmp.lt.u32.totalorder %s1719_s3, %s1918_s0  ;;  %p1478_p6 = scmp.lt.u32.totalorder %s1476_s29, %s1471_s6 }
  0x3c   : > { %p1474_p0 = pnand %p1473_p13, %p1472_p12  ;;  %p1480_p4 = scmp.lt.u32.totalorder %s1471_s6, %s1719_s3 }
  0x3d   : > { %p1479_p1 = por %p1478_p6, %p1477_p3 }
  0x3e   : > { %p1475_p2 = pneg %p1474_p0 }
  0x3f   : > { %p1481_p5 = por %p1480_p4, %p1479_p1 }
  0x41   : > { %p1482_p8 = pnand %p1481_p5, %p1475_p2 }
  0x43   : > { %1485 = shalt.err (!%p1482_p8)
}
  0x44   : > { %s1486_s28 = scalar_lea.vmem %s1714_s13, 128  ;;  %s1576_s9 = smov [#allocation3]  }
  0x45   : > { %p1487_p9 = scmp.ne.s32.totalorder %s1714_s13, %s1486_s28  ;;  %s1491_s10 = sshll.u32 %s1576_s9, 4  ;;  %s1492_s10 = int_to_ptr.vmem [resolvable:$false] %s1491_s10 }
  0x46   : > { %s1493_s11 = scalar_lea.vmem %s1492_s10, 256  ;;  %p1494_p12 = scmp.lt.s32.totalorder %s1714_s13, %s1492_s10 }
  0x47   : > { %p1489_p10 = pnand %p1487_p9, %p1473_p13  ;;  %p1495_p0 = scmp.lt.s32.totalorder %s1493_s11, %s1486_s28 }
  0x49   : > { %p1490_p7 = pneg %p1489_p10  ;;  %p1496_p3 = por %p1495_p0, %p1494_p12 }
  0x4b   : > { %p1497_p6 = pnand %p1496_p3, %p1490_p7 }
  0x4d   : > { %1500 = shalt.err (!%p1497_p6)
}
  0x4e   : > { %s1577_s12 = smov 64   ;;  %s1578_s15 = smov 4  }
  0x4f   : > { %1335 = dma.hbm_to_vmem [thread:$0]  (!%p1725_p11), %s1719_s3, 128, %s1714_s13, %s1729_s30, %s1577_s12, %s1577_s12, %s1578_s15  }
  0x50   : > { %p1939_p13 = scmp.ne.s32.totalorder %s1933_s26, 0 }
  0x51   : > { %s211_s6 = sand.u32 (!%p1939_p13), 1, %s1547_s16   ;;  %p1940_p2 = scmp.ne.s32.totalorder (!%p1939_p13), %s1932_s25, 0 }
  0x52   : > { %209 = sbr.rel (%p1939_p13) target bundleno = 1298 (0x512), region = 36  ;;  %s1760_s1 = sshll.u32 (!%p1939_p13), %s211_s6, 3 }
  0x53   : > { %s212_s23 = scalar_lea.sflag (!%p1939_p13), [#allocation4], %s211_s6  ;;  %s215_s29 = scalar_lea.vmem (!%p1939_p13), [#allocation3], %s1760_s1 }
  0x59   : > { %1534 = dma.done.wait (%p1940_p2), %s212_s23, 128  }
  0x5a   : > { %1536 = vsyncadd (%p1940_p2), %s212_s23, 4294967168  ;;  %p1941_p1 = scmp.ne.s32.totalorder %s1931_s24, 0 }
  0x5c   : > { %1538 = dma.done.wait (%p1941_p1), [#allocation6], 512  }
  0x5d   : > { %1540 = vsyncadd (%p1941_p1), [#allocation6], 4294966784  ;;  %p245_p11 = scmp.lt.s32.totalorder %s1559_s19, 1  ;;  %p1096_p4 = scmp.ne.s32.totalorder %s1555_s18, 0 }
  0x5e   : > { %v1579_v0 = vmov (!%p1096_p4), 0.0  }
  0x5f   : > { %s1958_s19 = smov (!%p245_p11, %s1559_s19), 1  ;;  %254 = sbr.rel (%p1096_p4) target bundleno = 104 (0x68), region = 48 }
  0x60   : > { %s1146_s3 = sshll.u32 %s1958_s19, 6  ;;  %255 = vst [vmem:[#allocation2] sm:$0xff] (!%p1096_p4), %v1579_v0  ;;  %256 = vst [vmem:[#allocation2 + $0x8] sm:$0xff] (!%p1096_p4), %v1579_v0 }
  0x61   : > { %s1776_s5 = scalar_lea.vmem %s1922_s4, %s1146_s3  ;;  %257 = vst [vmem:[#allocation2 + $0x10] sm:$0xff] (!%p1096_p4), %v1579_v0  ;;  %258 = vst [vmem:[#allocation2 + $0x18] sm:$0xff] (!%p1096_p4), %v1579_v0 }
  0x62   : > { %259 = vst [vmem:[#allocation2 + $0x20] sm:$0xff] (!%p1096_p4), %v1579_v0  ;;  %260 = vst [vmem:[#allocation2 + $0x28] sm:$0xff] (!%p1096_p4), %v1579_v0 }
  0x63   : > { %261 = vst [vmem:[#allocation2 + $0x30] sm:$0xff] (!%p1096_p4), %v1579_v0  ;;  %262 = vst [vmem:[#allocation2 + $0x38] sm:$0xff] (!%p1096_p4), %v1579_v0 }
  0x64   : > { %263 = vst [vmem:[#allocation2 + $0x40] sm:$0xff] (!%p1096_p4), %v1579_v0  ;;  %264 = vst [vmem:[#allocation2 + $0x48] sm:$0xff] (!%p1096_p4), %v1579_v0 }
  0x65   : > { %265 = vst [vmem:[#allocation2 + $0x50] sm:$0xff] (!%p1096_p4), %v1579_v0  ;;  %266 = vst [vmem:[#allocation2 + $0x58] sm:$0xff] (!%p1096_p4), %v1579_v0 }
  0x66   : > { %267 = vst [vmem:[#allocation2 + $0x60] sm:$0xff] %v1579_v0  ;;  %268 = vst [vmem:[#allocation2 + $0x68] sm:$0xff] %v1579_v0 }
  0x67   : > { %269 = vst [vmem:[#allocation2 + $0x70] sm:$0xff] %v1579_v0  ;;  %270 = vst [vmem:[#allocation2 + $0x78] sm:$0xff] %v1579_v0 }
  0x68 PF: > { %v1412_v1 = vld [vmem:[#allocation5 + $0x4] ss:$8 sps:$4 sm:$0xff]   ;;  %v1414_v2 = vld [vmem:[#allocation5] ss:$8 sps:$4 sm:$0xff]   ;;  %v1580_v3 = vmov 0   ;;  %vm302_vm0 = vcmask 261120  }
  0x69   : > { %338 = vmatprep.mubr.bf16.mxu0 %v1580_v3  ;;  %306 = vmatprep.subr.bf16.mxu0 %v1412_v1  ;;  %v1415_v4 = vld [vmem:[#allocation5 + $0x14] ss:$8 sps:$4 sm:$0xff]   ;;  %v1417_v5 = vld [vmem:[#allocation5 + $0x10] ss:$8 sps:$4 sm:$0xff]   ;;  %v1581_v8 = vmov 0.0   ;;  %v1421_v10 = vld [vmem:[%s1920_s2 + $0x10] sm:$0xff]  }
  0x6a   : > { %307 = vmatpush1.bf16.msra.mxu0 %v1414_v2  ;;  %v1418_v6 = vld [vmem:[%s215_s29] sm:$0xff]   ;;  %1236 = vmatprep.subr.bf16.mxu1 %v1581_v8  ;;  %v1422_v16 = vld [vmem:[%s1920_s2 + $0x18] sm:$0xff]   ;;  %vm1582_vm1 = vmmov 0   ;;  %v1425_v19 = vld [vmem:[%s1920_s2 + $0x30] sm:$0xff]   ;;  %vm503_vm2 = vcmask 130048   ;;  %p1119_p5 = scmp.ne.s32.totalorder %s1555_s18, 1 }
  0x6b   : > { %308 = vmatprep.subr.bf16.mxu0 %v1415_v4  ;;  %v1419_v7 = vld [vmem:[%s1920_s2] sm:$0xff]   ;;  %v1420_v9 = vld [vmem:[%s1920_s2 + $0x8] sm:$0xff]   ;;  %1252 = vmatprep.mubr.msk.bf16.mxu1 %vm1582_vm1, %v1581_v8  ;;  %v1426_v20 = vld [vmem:[%s1920_s2 + $0x38] sm:$0xff]   ;;  %s1942_s13 = sld [smem:[#allocation11_spill]] (!%p1119_p5)  ;;  %vm974_vm3 = vcmask (!%p1119_p5), 257024  }
  0x6c   : > { %1237 = vmatpush3.bf16.msra.mxu1 %v1419_v7  ;;  %v1423_v17 = vld [vmem:[%s1920_s2 + $0x20] sm:$0xff]   ;;  %v1424_v18 = vld [vmem:[%s1920_s2 + $0x28] sm:$0xff]   ;;  %v471_v47 = vld [vmem:[#allocation2 + $0x10] sm:$0xff] }
  0x6d   : > { %1238 = vmatprep.subr.bf16.mxu1 %v1581_v8  ;;  %v469_v48 = vld [vmem:[#allocation2] sm:$0xff]  ;;  %v472_v50 = vld [vmem:[#allocation2 + $0x18] sm:$0xff]  ;;  %v470_v53 = vld [vmem:[#allocation2 + $0x8] sm:$0xff] }
  0x6e   : > { %309 = vmatpush1.bf16.msra.mxu0 %v1417_v5  ;;  %v475_v59 = vld [vmem:[#allocation2 + $0x30] sm:$0xff]  ;;  %v473_v60 = vld [vmem:[#allocation2 + $0x20] sm:$0xff]  ;;  %v476_v62 = vld [vmem:[#allocation2 + $0x38] sm:$0xff] }
  0x6f   : > { %v474_v1 = vld [vmem:[#allocation2 + $0x28] sm:$0xff]  ;;  %v479_v7 = vld [vmem:[#allocation2 + $0x50] sm:$0xff] }
  0x70   : > { %1239 = vmatpush3.bf16.msra.mxu1 %v1420_v9 }
  0x71   : > { %1102 = vmatmul.mubr.msk.bf16.vlgmr.msra.gmra.mrb[0].mxu0 %vm302_vm0, %v1418_v6  ;;  %1240 = vmatprep.subr.bf16.mxu1 %v1581_v8 }
  0x74   : > { %1241 = vmatpush3.bf16.msra.mxu1 %v1421_v10  ;;  %v480_v10 = vld [vmem:[#allocation2 + $0x58] sm:$0xff] }
  0x75   : > { %1242 = vmatprep.subr.bf16.mxu1 %v1581_v8 }
  0x78   : > { %1243 = vmatpush3.bf16.msra.mxu1 %v1422_v16 }
  0x79   : > { %1244 = vmatprep.subr.bf16.mxu1 %v1581_v8 }
  0x7c   : > { %1245 = vmatpush3.bf16.msra.mxu1 %v1423_v17 }
  0x7d   : > { %1246 = vmatprep.subr.bf16.mxu1 %v1581_v8 }
  0x80   : > { %1247 = vmatpush3.bf16.msra.mxu1 %v1424_v18 }
  0x81   : > { %1248 = vmatprep.subr.bf16.mxu1 %v1581_v8 }
  0x84   : > { %1249 = vmatpush3.bf16.msra.mxu1 %v1425_v19  ;;  %v483_v19 = vld [vmem:[#allocation2 + $0x70] sm:$0xff] }
  0x85   : > { %1250 = vmatprep.subr.bf16.mxu1 %v1581_v8  ;;  %v477_v8 = vld [vmem:[#allocation2 + $0x40] sm:$0xff] }
  0x88   : > { %1251 = vmatpush3.bf16.msra.mxu1 %v1426_v20  ;;  %v481_v20 = vld [vmem:[#allocation2 + $0x60] sm:$0xff] }
 0x144   : > { %v340_v11 = vpop.f32.mrb[0].mxu0 }
 0x145   : > { %349 = vmax.xlane.f32.xlu0 %v340_v11  ;;  %v342_v12 = vpop.f32.mrb[1].mxu0 }
 0x146   : > { %v344_v13 = vpop.f32.mrb[2].mxu0 }
 0x147   : > { %v346_v14 = vpop.f32.mrb[3].mxu0 }
 0x148   : > { %v486_v15 = vpack.c.bf16 %v346_v14, %v342_v12 }
 0x149   : > { %351 = vmax.xlane.f32.xlu0 %v344_v13 }
 0x14a   : > { %1256 = vmatprep.subr.bf16.mxu0 %v486_v15 }
 0x14b   : > { %1257 = vmatpush3.bf16.msra.mxu0 %v486_v15 }
 0x1d2   : > { %v350_v21 = vpop.xlane.xlu0 %349 }
 0x1d3   : > { %v353_v22 = vsub.f32 %v340_v11, %v350_v21 }
 0x1d5   : > { %v355_v23 = vmul.f32 1.442695, %v353_v22  ;;  %v484_v22 = vld [vmem:[#allocation2 + $0x78] sm:$0xff] }
 0x1d6   : > { %v352_v24 = vpop.xlane.xlu0 %351 }
 0x1d7   : > { %v354_v25 = vsub.f32 %v344_v13, %v352_v24  ;;  %1427 = vpow2.f32 %v355_v23  ;;  %v478_v13 = vld [vmem:[#allocation2 + $0x48] sm:$0xff] }
 0x1d9   : > { %v357_v26 = vmul.f32 1.442695, %v354_v25  ;;  %v482_v25 = vld [vmem:[#allocation2 + $0x68] sm:$0xff] }
 0x1db   : > { %1429 = vpow2.f32 %v357_v26 }
 0x1e1   : > { %v1428_v27 = vpop.eup %1427 }
 0x1e5   : > { %v1430_v28 = vpop.eup %1429 }
 0x1e6   : > { %v359_v29 = vpack.c.bf16 %v1430_v28, %v1428_v27 }
 0x1e8   : > { %1253 = vmatmul.mubr.bf16.vlgmr.msra.gmra.mrb[0].mxu1 %v359_v29 }
 0x2bb   : > { %v458_v30 = vpop.f32.mrb[0].mxu1 }
 0x2bc   : > { %1431 = vrcp.f32 %v458_v30  ;;  %v1254_v31 = vpop.f32.mrb[1].mxu1 }
 0x2bd   : > { %v461_v32 = vpop.f32.mrb[2].mxu1  ;;  %v1435_v31 = vld [vmem:[%s1942_s13] sm:$0xff] (!%p1119_p5)  }
 0x2be   : > { %1433 = vrcp.f32 %v461_v32  ;;  %v1255_v33 = vpop.f32.mrb[3].mxu1  ;;  %v1436_v32 = vld [vmem:[%s1942_s13 + $0x8] sm:$0xff] (!%p1119_p5)   ;;  %1274 = vmatprep.subr.bf16.mxu0 (!%p1119_p5), %v1435_v31  ;;  %1306 = vmatprep.subr.bf16.mxu1 (!%p1119_p5), %v1435_v31 }
 0x2bf   : > { %1314 = vmatpush3.bf16.msra.mxu1 (!%p1119_p5), %v1435_v31  ;;  %v1437_v33 = vld [vmem:[%s1942_s13 + $0x10] sm:$0xff] (!%p1119_p5)  }
 0x2c0   : > { %1307 = vmatprep.subr.bf16.mxu1 (!%p1119_p5), %v1436_v32 }
 0x2c3   : > { %1315 = vmatpush3.bf16.msra.mxu1 (!%p1119_p5), %v1436_v32 }
 0x2c4   : > { %1308 = vmatprep.subr.bf16.mxu1 (!%p1119_p5), %v1437_v33 }
 0x2c6   : > { %v1432_v34 = vpop.eup %1431 }
 0x2c7   : > { %v467_v36 = vmul.f32 %v1432_v34, %v1428_v27  ;;  %v1438_v34 = vld [vmem:[%s1942_s13 + $0x18] sm:$0xff] (!%p1119_p5)   ;;  %1316 = vmatpush3.bf16.msra.mxu1 (!%p1119_p5), %v1437_v33 }
 0x2c8   : > { %v1434_v35 = vpop.eup %1433  ;;  %1309 = vmatprep.subr.bf16.mxu1 (!%p1119_p5), %v1438_v34 }
 0x2c9   : > { %v468_v37 = vmul.f32 %v1434_v35, %v1430_v28 }
 0x2cb   : > { %v485_v38 = vpack.c.bf16 %v468_v37, %v467_v36  ;;  %v1164_v37 = vld [vmem:[%s1920_s2] sm:$0xff] (!%p1119_p5)   ;;  %1317 = vmatpush3.bf16.msra.mxu1 (!%p1119_p5), %v1438_v34 }
 0x2cd   : > { %487 = vxpose.xlu1.c.b16.start.end [1/1] (short) %v485_v38, 128  ;;  %v1165_v38 = vunpack.c.l.bf16 (!%p1119_p5), %v1164_v37 }
 0x333   : > { %v495_v39 = vpop.trf.xlu1 }
 0x334   : > { %1258 = vmatprep.mubr.msk.bf16.mxu0 %vm503_vm2, %v495_v39  ;;  %v1166_v39 = vunpack.c.h.bf16 (!%p1119_p5), %v1164_v37 }
 0x337   : > { %v496_v40 = vpop.trf.xlu1 }
 0x338   : > { %1259 = vmatmul.mubr.msk.bf16.vlgmr.msra.gmra.mrb[4].mxu0 %vm503_vm2, %v496_v40 }
 0x339   : > { %1275 = vmatpush3.bf16.msra.mxu0 (!%p1119_p5), %v1435_v31 }
 0x33a   : > { %1276 = vmatprep.subr.bf16.mxu0 (!%p1119_p5), %v1436_v32 }
 0x33b   : > { %v497_v41 = vpop.trf.xlu1 }
 0x33c   : > { %1262 = vmatprep.mubr.msk.bf16.mxu0 %vm503_vm2, %v497_v41 }
 0x33d   : > { %1277 = vmatpush3.bf16.msra.mxu0 (!%p1119_p5), %v1436_v32 }
 0x33e   : > { %1278 = vmatprep.subr.bf16.mxu0 (!%p1119_p5), %v1437_v33 }
 0x33f   : > { %v498_v42 = vpop.trf.xlu1 }
 0x340   : > { %1263 = vmatmul.mubr.msk.bf16.gmra.mrb[8].mxu0 %vm503_vm2, %v498_v42  ;;  %v1198_v42 = vld [vmem:[%s1920_s2 + $0x20] sm:$0xff] (!%p1119_p5)  }
 0x341   : > { %1279 = vmatpush3.bf16.msra.mxu0 (!%p1119_p5), %v1437_v33 }
 0x342   : > { %1280 = vmatprep.subr.bf16.mxu0 (!%p1119_p5), %v1438_v34 }
 0x343   : > { %v499_v43 = vpop.trf.xlu1 }
 0x344   : > { %1266 = vmatprep.mubr.msk.bf16.mxu0 %vm503_vm2, %v499_v43  ;;  %v1181_v43 = vunpack.c.l.bf16 (!%p1119_p5), %v1198_v42 }
 0x345   : > { %1281 = vmatpush3.bf16.msra.mxu0 (!%p1119_p5), %v1438_v34 }
 0x347   : > { %v500_v44 = vpop.trf.xlu1 }
 0x348   : > { %1267 = vmatmul.mubr.msk.bf16.gmra.mrb[12].mxu0 %vm503_vm2, %v500_v44  ;;  %v1182_v44 = vunpack.c.h.bf16 (!%p1119_p5), %v1198_v42 }
 0x34b   : > { %v501_v45 = vpop.trf.xlu1 }
 0x34c   : > { %1270 = vmatprep.mubr.msk.bf16.mxu0 %vm503_vm2, %v501_v45 }
 0x34f   : > { %v502_v46 = vpop.trf.xlu1 }
 0x350   : > { %1271 = vmatmul.mubr.msk.bf16.gmra.mrb[16].mxu0 %vm503_vm2, %v502_v46 }
 0x40b   : > { %v1260_v49 = vpop.f32.mrb[4].mxu0 }
 0x40c   : > { %v627_v51 = vadd.f32 %v1260_v49, %v471_v47  ;;  %v562_v52 = vpop.f32.mrb[5].mxu0  ;;  %v1439_v47 = vld [vmem:[%s1942_s13 + $0x20] sm:$0xff] (!%p1119_p5)  }
 0x40d   : > { %v625_v54 = vadd.f32 %v562_v52, %v469_v48  ;;  %v1261_v55 = vpop.f32.mrb[6].mxu0  ;;  %1282 = vmatprep.subr.bf16.mxu0 (!%p1119_p5), %v1439_v47  ;;  %1310 = vmatprep.subr.bf16.mxu1 (!%p1119_p5), %v1439_v47  ;;  %v1440_v52 = vld [vmem:[%s1942_s13 + $0x28] sm:$0xff] (!%p1119_p5)  }
 0x40e   : > { %643 = vst [vmem:[#allocation2 + $0x10] sm:$0xff] %v627_v51  ;;  %v628_v56 = vadd.f32 %v1261_v55, %v472_v50  ;;  %v565_v57 = vpop.f32.mrb[7].mxu0  ;;  %1283 = vmatpush3.bf16.msra.mxu0 (!%p1119_p5), %v1439_v47  ;;  %1318 = vmatpush3.bf16.msra.mxu1 (!%p1119_p5), %v1439_v47  ;;  %v1196_v55 = vld [vmem:[%s1920_s2 + $0x10] sm:$0xff] (!%p1119_p5)  }
 0x40f   : > { %641 = vst [vmem:[#allocation2] sm:$0xff] %v625_v54  ;;  %v626_v58 = vadd.f32 %v565_v57, %v470_v53  ;;  %v1195_v53 = vld [vmem:[%s1920_s2 + $0x8] sm:$0xff] (!%p1119_p5)   ;;  %1284 = vmatprep.subr.bf16.mxu0 (!%p1119_p5), %v1440_v52  ;;  %1311 = vmatprep.subr.bf16.mxu1 (!%p1119_p5), %v1440_v52  ;;  %v1200_v57 = vld [vmem:[%s1920_s2 + $0x30] sm:$0xff] (!%p1119_p5)  }
 0x410   : > { %644 = vst [vmem:[#allocation2 + $0x18] sm:$0xff] %v628_v56  ;;  %v1199_v54 = vld [vmem:[%s1920_s2 + $0x28] sm:$0xff] (!%p1119_p5)   ;;  %v1441_v56 = vld [vmem:[%s1942_s13 + $0x30] sm:$0xff] (!%p1119_p5)  }
 0x411   : > { %642 = vst [vmem:[#allocation2 + $0x8] sm:$0xff] %v626_v58  ;;  %v1169_v58 = vunpack.c.l.bf16 (!%p1119_p5), %v1195_v53 }
 0x412   : > { %1285 = vmatpush3.bf16.msra.mxu0 (!%p1119_p5), %v1440_v52  ;;  %1319 = vmatpush3.bf16.msra.mxu1 (!%p1119_p5), %v1440_v52 }
 0x413   : > { %v1264_v61 = vpop.f32.mrb[8].mxu0  ;;  %1286 = vmatprep.subr.bf16.mxu0 (!%p1119_p5), %v1441_v56  ;;  %1312 = vmatprep.subr.bf16.mxu1 (!%p1119_p5), %v1441_v56 }
 0x414   : > { %v631_v63 = vadd.f32 %v1264_v61, %v475_v59  ;;  %v578_v0 = vpop.f32.mrb[9].mxu0  ;;  %v1170_v59 = vunpack.c.h.bf16 (!%p1119_p5), %v1195_v53 }
 0x415   : > { %v629_v2 = vadd.f32 %v578_v0, %v473_v60  ;;  %v1265_v3 = vpop.f32.mrb[10].mxu0  ;;  %v1442_v60 = vld [vmem:[%s1942_s13 + $0x38] sm:$0xff] (!%p1119_p5)   ;;  %v663_v61 = vld [vmem:[#allocation2 + $0x10] sm:$0xff] (!%p1119_p5)  ;;  %v1186_v0 = vunpack.c.h.bf16 (!%p1119_p5), %v1199_v54 }
 0x416   : > { %647 = vst [vmem:[#allocation2 + $0x30] sm:$0xff] %v631_v63  ;;  %v632_v4 = vadd.f32 %v1265_v3, %v476_v62  ;;  %v581_v5 = vpop.f32.mrb[11].mxu0  ;;  %v661_v35 = vld [vmem:[#allocation2] sm:$0xff] (!%p1119_p5)  ;;  %v1185_v63 = vunpack.c.l.bf16 (!%p1119_p5), %v1199_v54  ;;  %1287 = vmatpush3.bf16.msra.mxu0 (!%p1119_p5), %v1441_v56  ;;  %1320 = vmatpush3.bf16.msra.mxu1 (!%p1119_p5), %v1441_v56 }
 0x417   : > { %645 = vst [vmem:[#allocation2 + $0x20] sm:$0xff] %v629_v2  ;;  %v630_v6 = vadd.f32 %v581_v5, %v474_v1  ;;  %v709_v45 = vmul.f32 (!%p1119_p5), %v1165_v38, %v661_v35  ;;  %v664_v62 = vld [vmem:[#allocation2 + $0x18] sm:$0xff] (!%p1119_p5)  ;;  %v1173_v1 = vunpack.c.l.bf16 (!%p1119_p5), %v1196_v55  ;;  %v1174_v5 = vunpack.c.h.bf16 (!%p1119_p5), %v1196_v55  ;;  %1288 = vmatprep.subr.bf16.mxu0 (!%p1119_p5), %v1442_v60  ;;  %1313 = vmatprep.subr.bf16.mxu1 (!%p1119_p5), %v1442_v60 }
 0x418   : > { %648 = vst [vmem:[#allocation2 + $0x38] sm:$0xff] %v632_v4  ;;  %v662_v36 = vld [vmem:[#allocation2 + $0x8] sm:$0xff] (!%p1119_p5) }
 0x419   : > { %646 = vst [vmem:[#allocation2 + $0x28] sm:$0xff] %v630_v6  ;;  %v710_v46 = vmul.f32 (!%p1119_p5), %v1166_v39, %v662_v36  ;;  %v1189_v6 = vunpack.c.l.bf16 (!%p1119_p5), %v1200_v57 }
 0x41a   : > { %1289 = vmatpush3.bf16.msra.mxu0 (!%p1119_p5), %v1442_v60  ;;  %1321 = vmatpush3.bf16.msra.mxu1 (!%p1119_p5), %v1442_v60 }
 0x41b   : > { %v1268_v9 = vpop.f32.mrb[12].mxu0  ;;  %v725_v50 = vpack.c.bf16 (!%p1119_p5), %v710_v46, %v709_v45 }
 0x41c   : > { %v635_v11 = vadd.f32 %v1268_v9, %v479_v7  ;;  %v594_v12 = vpop.f32.mrb[13].mxu0  ;;  %v1190_v7 = vunpack.c.h.bf16 (!%p1119_p5), %v1200_v57 }
 0x41d   : > { %v633_v14 = vadd.f32 %v594_v12, %v477_v8  ;;  %v1269_v15 = vpop.f32.mrb[14].mxu0  ;;  %1290 = vmatprep.mubr.bf16.mxu0 (!%p1119_p5), %v725_v50  ;;  %v712_v12 = vmul.f32 (!%p1119_p5), %v1170_v59, %v664_v62 }
 0x41e   : > { %651 = vst [vmem:[#allocation2 + $0x50] sm:$0xff] %v635_v11  ;;  %v636_v16 = vadd.f32 %v1269_v15, %v480_v10  ;;  %v597_v17 = vpop.f32.mrb[15].mxu0  ;;  %v665_v4 = vld [vmem:[#allocation2 + $0x20] sm:$0xff] (!%p1119_p5)  ;;  %v711_v11 = vmul.f32 (!%p1119_p5), %v1169_v58, %v663_v61 }
 0x41f   : > { %649 = vst [vmem:[#allocation2 + $0x40] sm:$0xff] %v633_v14  ;;  %v634_v18 = vadd.f32 %v597_v17, %v478_v13  ;;  %v713_v15 = vmul.f32 (!%p1119_p5), %v1173_v1, %v665_v4 }
 0x420   : > { %652 = vst [vmem:[#allocation2 + $0x58] sm:$0xff] %v636_v16  ;;  %v666_v8 = vld [vmem:[#allocation2 + $0x28] sm:$0xff] (!%p1119_p5)  ;;  %v1197_v16 = vld [vmem:[%s1920_s2 + $0x18] sm:$0xff] (!%p1119_p5)  }
 0x421   : > { %650 = vst [vmem:[#allocation2 + $0x48] sm:$0xff] %v634_v18  ;;  %v714_v17 = vmul.f32 (!%p1119_p5), %v1174_v5, %v666_v8 }
 0x423   : > { %v1272_v21 = vpop.f32.mrb[16].mxu0  ;;  %660 = sbr.rel (%p1119_p5) target bundleno = 1298 (0x512), region = 52 }
 0x424   : > { %v639_v23 = vadd.f32 %v1272_v21, %v483_v19  ;;  %v610_v24 = vpop.f32.mrb[17].mxu0  ;;  %v726_v21 = vpack.c.bf16 (!%p1119_p5), %v712_v12, %v711_v11 }
 0x425   : > { %v637_v26 = vadd.f32 %v610_v24, %v481_v20  ;;  %v1273_v27 = vpop.f32.mrb[18].mxu0  ;;  %v671_v2 = vld [vmem:[#allocation2 + $0x50] sm:$0xff] (!%p1119_p5)  ;;  %v1201_v20 = vld [vmem:[%s1920_s2 + $0x38] sm:$0xff] (!%p1119_p5)  }
 0x426   : > { %655 = vst [vmem:[#allocation2 + $0x70] sm:$0xff] %v639_v23  ;;  %v640_v28 = vadd.f32 %v1273_v27, %v484_v22  ;;  %v613_v29 = vpop.f32.mrb[19].mxu0  ;;  %v669_v40 = vld [vmem:[#allocation2 + $0x40] sm:$0xff] (!%p1119_p5)  ;;  %v719_v13 = vmul.f32 (!%p1119_p5), %v1185_v63, %v671_v2  ;;  %v1177_v22 = vunpack.c.l.bf16 (!%p1119_p5), %v1197_v16  ;;  %v667_v24 = vld [vmem:[#allocation2 + $0x30] sm:$0xff] (!%p1119_p5)  ;;  %v1194_v27 = vunpack.c.h.bf16 (!%p1119_p5), %v1201_v20  ;;  %1291 = vmatmul.mubr.bf16.vlgmr.msra.gmra.mrb[0].mxu0 (!%p1119_p5), %v726_v21 }
 0x427   : > { %653 = vst [vmem:[#allocation2 + $0x60] sm:$0xff] %v637_v26  ;;  %v638_v30 = vadd.f32 %v613_v29, %v482_v25  ;;  %v717_v48 = vmul.f32 (!%p1119_p5), %v1181_v43, %v669_v40  ;;  %v672_v3 = vld [vmem:[#allocation2 + $0x58] sm:$0xff] (!%p1119_p5)  ;;  %v1178_v25 = vunpack.c.h.bf16 (!%p1119_p5), %v1197_v16  ;;  %v1193_v26 = vunpack.c.l.bf16 (!%p1119_p5), %v1201_v20 }
 0x428   : > { %656 = vst [vmem:[#allocation2 + $0x78] sm:$0xff] %v640_v28  ;;  %v670_v41 = vld [vmem:[#allocation2 + $0x48] sm:$0xff] (!%p1119_p5)  ;;  %v720_v14 = vmul.f32 (!%p1119_p5), %v1186_v0, %v672_v3  ;;  %v727_v28 = vpack.c.bf16 (!%p1119_p5), %v714_v17, %v713_v15  ;;  %v715_v33 = vmul.f32 (!%p1119_p5), %v1177_v22, %v667_v24 }
 0x429   : > { %654 = vst [vmem:[#allocation2 + $0x68] sm:$0xff] %v638_v30  ;;  %v718_v49 = vmul.f32 (!%p1119_p5), %v1182_v44, %v670_v41  ;;  %v668_v30 = vld [vmem:[#allocation2 + $0x38] sm:$0xff] (!%p1119_p5) }
 0x42a   : > { %v730_v23 = vpack.c.bf16 %v720_v14, %v719_v13  ;;  %v716_v34 = vmul.f32 %v1178_v25, %v668_v30  ;;  %1294 = vmatprep.mubr.bf16.mxu0 %v727_v28 }
 0x42b   : > { %v729_v51 = vpack.c.bf16 %v718_v49, %v717_v48 }
 0x42c   : > { %v728_v37 = vpack.c.bf16 %v716_v34, %v715_v33 }
 0x42d   : > { %1298 = vmatprep.mubr.bf16.mxu1 %v729_v51  ;;  %v675_v31 = vld [vmem:[#allocation2 + $0x70] sm:$0xff] }
 0x42e   : > { %v673_v9 = vld [vmem:[#allocation2 + $0x60] sm:$0xff]  ;;  %1299 = vmatmul.mubr.bf16.vlgmr.msra.gmra.mrb[0].mxu1 %v730_v23  ;;  %v723_v35 = vmul.f32 %v1193_v26, %v675_v31  ;;  %1295 = vmatmul.mubr.bf16.gmra.mrb[4].mxu0 %v728_v37 }
 0x42f   : > { %v721_v18 = vmul.f32 %v1189_v6, %v673_v9  ;;  %v676_v32 = vld [vmem:[#allocation2 + $0x78] sm:$0xff] }
 0x430   : > { %v674_v10 = vld [vmem:[#allocation2 + $0x68] sm:$0xff]  ;;  %v724_v36 = vmul.f32 %v1194_v27, %v676_v32 }
 0x431   : > { %v722_v19 = vmul.f32 %v1190_v7, %v674_v10 }
 0x432   : > { %v732_v38 = vpack.c.bf16 %v724_v36, %v723_v35 }
 0x433   : > { %v731_v29 = vpack.c.bf16 %v722_v19, %v721_v18 }
 0x435   : > { %1302 = vmatprep.mubr.bf16.mxu1 %v731_v29 }
 0x436   : > { %1303 = vmatmul.mubr.bf16.gmra.mrb[4].mxu1 %v732_v38 }
 0x4f9   : > { %v1292_v39 = vpop.f32.mrb[0].mxu0 }
 0x4fa   : > { %v896_v41 = vmul.f32 0.17677669, %v1292_v39  ;;  %v831_v43 = vpop.f32.mrb[1].mxu0 }
 0x4fb   : > { %v894_v45 = vmul.f32 0.17677669, %v831_v43  ;;  %v1293_v47 = vpop.f32.mrb[2].mxu0 }
 0x4fc   : > { %v1149_v49 = vpack.c.bf16 %v896_v41, %v896_v41  ;;  %v897_v51 = vmul.f32 0.17677669, %v1293_v47  ;;  %v834_v53 = vpop.f32.mrb[3].mxu0 }
 0x4fd   : > { %v1147_v55 = vpack.c.bf16 %v894_v45, %v894_v45  ;;  %v895_v57 = vmul.f32 0.17677669, %v834_v53 }
 0x4fe   : > { %977 = vst.msk [vmem:[%s1776_s5 + $0x8] sm:$0xf] %vm974_vm3, %v1149_v49  ;;  %v1150_v59 = vpack.c.bf16 %v897_v51, %v897_v51 }
 0x4ff   : > { %975 = vst.msk [vmem:[%s1776_s5] sm:$0xf] %vm974_vm3, %v1147_v55  ;;  %v1148_v61 = vpack.c.bf16 %v895_v57, %v895_v57 }
 0x500   : > { %978 = vst.msk [vmem:[%s1776_s5 + $0xc] sm:$0xf] %vm974_vm3, %v1150_v59 }
 0x501   : > { %v1300_v40 = vpop.f32.mrb[0].mxu1  ;;  %976 = vst.msk [vmem:[%s1776_s5 + $0x4] sm:$0xf] %vm974_vm3, %v1148_v61  ;;  %v1296_v63 = vpop.f32.mrb[4].mxu0 }
 0x502   : > { %v904_v42 = vmul.f32 0.17677669, %v1300_v40  ;;  %v863_v44 = vpop.f32.mrb[1].mxu1  ;;  %v900_v1 = vmul.f32 0.17677669, %v1296_v63  ;;  %v847_v3 = vpop.f32.mrb[5].mxu0 }
 0x503   : > { %v902_v46 = vmul.f32 0.17677669, %v863_v44  ;;  %v1301_v48 = vpop.f32.mrb[2].mxu1  ;;  %v898_v5 = vmul.f32 0.17677669, %v847_v3  ;;  %v1297_v7 = vpop.f32.mrb[6].mxu0 }
 0x504   : > { %v1157_v50 = vpack.c.bf16 %v904_v42, %v904_v42  ;;  %v905_v52 = vmul.f32 0.17677669, %v1301_v48  ;;  %v866_v54 = vpop.f32.mrb[3].mxu1  ;;  %v1153_v9 = vpack.c.bf16 %v900_v1, %v900_v1  ;;  %v901_v11 = vmul.f32 0.17677669, %v1297_v7  ;;  %v850_v13 = vpop.f32.mrb[7].mxu0 }
 0x505   : > { %v1155_v56 = vpack.c.bf16 %v902_v46, %v902_v46  ;;  %v903_v58 = vmul.f32 0.17677669, %v866_v54  ;;  %v1151_v15 = vpack.c.bf16 %v898_v5, %v898_v5  ;;  %v899_v17 = vmul.f32 0.17677669, %v850_v13 }
 0x506   : > { %985 = vst.msk [vmem:[%s1776_s5 + $0x28] sm:$0xf] %vm974_vm3, %v1157_v50  ;;  %v1158_v60 = vpack.c.bf16 %v905_v52, %v905_v52  ;;  %981 = vst.msk [vmem:[%s1776_s5 + $0x18] sm:$0xf] %vm974_vm3, %v1153_v9  ;;  %v1154_v19 = vpack.c.bf16 %v901_v11, %v901_v11 }
 0x507   : > { %983 = vst.msk [vmem:[%s1776_s5 + $0x20] sm:$0xf] %vm974_vm3, %v1155_v56  ;;  %v1156_v62 = vpack.c.bf16 %v903_v58, %v903_v58  ;;  %979 = vst.msk [vmem:[%s1776_s5 + $0x10] sm:$0xf] %vm974_vm3, %v1151_v15  ;;  %v1152_v21 = vpack.c.bf16 %v899_v17, %v899_v17 }
 0x508   : > { %986 = vst.msk [vmem:[%s1776_s5 + $0x2c] sm:$0xf] %vm974_vm3, %v1158_v60  ;;  %982 = vst.msk [vmem:[%s1776_s5 + $0x1c] sm:$0xf] %vm974_vm3, %v1154_v19 }
 0x509   : > { %984 = vst.msk [vmem:[%s1776_s5 + $0x24] sm:$0xf] %vm974_vm3, %v1156_v62  ;;  %v1304_v0 = vpop.f32.mrb[4].mxu1  ;;  %980 = vst.msk [vmem:[%s1776_s5 + $0x14] sm:$0xf] %vm974_vm3, %v1152_v21 }
 0x50a   : > { %v908_v2 = vmul.f32 0.17677669, %v1304_v0  ;;  %v879_v4 = vpop.f32.mrb[5].mxu1 }
 0x50b   : > { %v906_v6 = vmul.f32 0.17677669, %v879_v4  ;;  %v1305_v8 = vpop.f32.mrb[6].mxu1 }
 0x50c   : > { %v1161_v10 = vpack.c.bf16 %v908_v2, %v908_v2  ;;  %v909_v12 = vmul.f32 0.17677669, %v1305_v8  ;;  %v882_v14 = vpop.f32.mrb[7].mxu1 }
 0x50d   : > { %v1159_v16 = vpack.c.bf16 %v906_v6, %v906_v6  ;;  %v907_v18 = vmul.f32 0.17677669, %v882_v14 }
 0x50e   : > { %989 = vst.msk [vmem:[%s1776_s5 + $0x38] sm:$0xf] %vm974_vm3, %v1161_v10  ;;  %v1162_v20 = vpack.c.bf16 %v909_v12, %v909_v12 }
 0x50f   : > { %987 = vst.msk [vmem:[%s1776_s5 + $0x30] sm:$0xf] %vm974_vm3, %v1159_v16  ;;  %v1160_v22 = vpack.c.bf16 %v907_v18, %v907_v18 }
 0x510   : > { %990 = vst.msk [vmem:[%s1776_s5 + $0x3c] sm:$0xf] %vm974_vm3, %v1162_v20 }
 0x511   : > { %988 = vst.msk [vmem:[%s1776_s5 + $0x34] sm:$0xf] %vm974_vm3, %v1160_v22 }
 0x512 PF: > { %s18_s22 = sadd.s32 1, %s1571_s22   ;;  %s1943_s12 = sld [smem:[#allocation9_spill]] }
 0x513   : > { %p15_p8 = scmp.ge.s32.totalorder %s18_s22, 6   ;;  %s1944_s15 = smov %s1547_s16 }
 0x514   : > { %s1945_s16 = smov %s1551_s17  ;;  %s1946_s17 = smov %s1712_s14 }
 0x515   : > { %s1947_s18 = smov %s1563_s20  ;;  %s1948_s19 = smov %s1567_s21 }
 0x516   : > { %s1950_s21 = smov %s1956_s27  ;;  %17 = sbr.rel (!%p15_p8) target bundleno = 9 (0x9), region = 88 }
 0x518   : > { %s1949_s20 = smov %s1943_s12 }
 0x51d   :  { %1012 = vsyncpa [#allocation4], 1 }
 0x51e   :  { %1014 = vsyncpa [#allocation4 + $0x1], 1 }
 0x51f   :  { %1015 = vsyncpa [#allocation6], 1 }

</bundles_post_ra>
